<compile_context>
chip_gen: v7x
topology: tpu7x:2x2x1
jax: 0.10.0
libtpu: 0.0.40
codegen_flags: <defaults>
</compile_context>

<pallas_src>
import jax
import jax.numpy as jnp
from jax.experimental import pallas as pl
from jax.experimental.pallas import tpu as pltpu

BN_EPS = 1e-5


def _pool_linear_kernel(x_ref, w_ref, y_ref):
    # x_ref: (tB, HW, C)  bf16 channels-last backbone features (one batch tile)
    # w_ref: (C, E)       f32 linear weight (pre-transposed), VMEM-resident
    # y_ref: (tB, E)      f32 pre-BN linear output
    x = x_ref[...].astype(jnp.float32)             # upcast once; f32 VPU adds
    inv_hw = 1.0 / x.shape[1]
    pooled = jnp.sum(x, axis=1) * inv_hw           # AvgPool over HW: sublane reduce, lanes stay dense (C)
    y_ref[...] = jnp.dot(pooled, w_ref[...],
                         preferred_element_type=jnp.float32)      # (tB, E) MXU matmul


def _bn_kernel(y_ref, b_ref, gamma_ref, beta_ref, out_ref):
    # Tiny whole-(B, E) pass: Linear bias add + BatchNorm1d (training-mode stats,
    # biased variance, eps=1e-5).  B*E is at most a few hundred KB -> one tile.
    y = y_ref[...] + b_ref[...]
    mu = jnp.mean(y, axis=0, keepdims=True)        # (1, E)
    d = y - mu
    var = jnp.mean(d * d, axis=0, keepdims=True)   # (1, E), biased
    out_ref[...] = ((d * jax.lax.rsqrt(var + BN_EPS)) * gamma_ref[...]
                    + beta_ref[...]).astype(out_ref.dtype)


def _pick_batch_tile(B, HW, C, *, target_bytes=8 << 20):
    """Largest power-of-two multiple of 8 dividing B whose bf16 x-tile <= target."""
    if B % 8 != 0:
        return B                                   # single full-array tile
    tb = 8
    while B % (tb * 2) == 0 and (tb * 2) * HW * C * 2 <= target_bytes:
        tb *= 2
    return tb


def encoder_forward(features_nchw, w, b, gamma, beta, *,
                    pooling_kernel=None, batch_tile=None):
    """features_nchw: (B, C, H, W) output of the (frozen) ResNet backbone.

    Requires H == W == pooling_kernel so AvgPool2d yields a 1x1 map and the
    flatten produces exactly C features (matching Linear(resnet.fc.in_features, E)).
    """
    B, C, H, W = features_nchw.shape
    E = w.shape[0]
    if pooling_kernel is not None:
        assert H == pooling_kernel and W == pooling_kernel, (
            "AvgPool2d kernel must cover the full spatial extent for the "
            "reshape(B, -1) flatten to yield C features")
    HW = H * W

    # Layout plumbing in the wrapper: NCHW -> channels-last (B, HW, C), bf16 for
    # the (memory-bound) HBM->VMEM transfer of the feature map.
    x = jnp.transpose(features_nchw, (0, 2, 3, 1)).reshape(B, HW, C)
    x = x.astype(jnp.bfloat16)
    wt = jnp.asarray(w, jnp.float32).T             # (C, E)

    tB = batch_tile if batch_tile is not None else _pick_batch_tile(B, HW, C)
    assert B % tB == 0, "batch must be divisible by the batch tile"
    grid = (B // tB,)

    cost = pl.CostEstimate(
        flops=2 * B * C * E + B * HW * C,
        transcendentals=0,
        bytes_accessed=B * HW * C * 2 + C * E * 4 + B * E * 4,
    )

    # Pass 1: pooled-matmul, pipelined over batch tiles; W resident in VMEM.
    y = pl.pallas_call(
        _pool_linear_kernel,
        out_shape=jax.ShapeDtypeStruct((B, E), jnp.float32),
        grid_spec=pltpu.PrefetchScalarGridSpec(
            num_scalar_prefetch=0,
            grid=grid,
            in_specs=[
                pl.BlockSpec((tB, HW, C), lambda i: (i, 0, 0)),   # double-buffered DMA
                pl.BlockSpec((C, E), lambda i: (0, 0)),           # fetched once, resident
            ],
            out_specs=pl.BlockSpec((tB, E), lambda i: (i, 0)),
        ),
        compiler_params=pltpu.CompilerParams(
            dimension_semantics=("parallel",),      # megacore sharding on v7x
            vmem_limit_bytes=48 * 1024 * 1024,      # headroom on v7x's 64 MiB VMEM
        ),
        cost_estimate=cost,
    )(x, wt)

    # Pass 2: bias + BatchNorm1d over the full batch (whole-batch reduction).
    vmem = pl.BlockSpec(memory_space=pltpu.MemorySpace.VMEM)
    out = pl.pallas_call(
        _bn_kernel,
        out_shape=jax.ShapeDtypeStruct((B, E), jnp.float32),
        in_specs=[vmem, vmem, vmem, vmem],
        out_specs=vmem,
    )(
        y,
        jnp.asarray(b, jnp.float32).reshape(1, E),
        jnp.asarray(gamma, jnp.float32).reshape(1, E),
        jnp.asarray(beta, jnp.float32).reshape(1, E),
    )
    return out


def reference_forward(features_nchw, w, b, gamma, beta):
    pooled = jnp.mean(features_nchw.astype(jnp.float32), axis=(2, 3))   # AvgPool(full) + flatten
    y = pooled @ w.T + b
    mu = jnp.mean(y, axis=0, keepdims=True)
    var = jnp.mean((y - mu) ** 2, axis=0, keepdims=True)
    return (y - mu) / jnp.sqrt(var + BN_EPS) * gamma + beta


if __name__ == "__main__":
    # Small stand-ins for ResNet-152 shapes:
    #   B=16 images, C=256 backbone channels (stand-in for 2048),
    #   spatial 4x4 with pooling_kernel=4, embedding_size E=128 (stand-in for 512).
    B, C, H, W, E = 16, 256, 4, 4, 128

    key = jax.random.PRNGKey(0)
    k_feat, k_w, k_b, k_g, k_beta = jax.random.split(key, 5)

    features = jax.random.normal(k_feat, (B, C, H, W), dtype=jnp.float32)
    w = jax.random.normal(k_w, (E, C), dtype=jnp.float32) * 0.05   # Linear weight
    b = jax.random.normal(k_b, (E,), dtype=jnp.float32) * 0.05     # Linear bias
    gamma = 1.0 + 0.1 * jax.random.normal(k_g, (E,), dtype=jnp.float32)  # BN weight
    beta = 0.1 * jax.random.normal(k_beta, (E,), dtype=jnp.float32)      # BN bias

    # batch_tile=8 -> grid=(2,) so the pipelined path (resident W, double-buffered
    # feature tiles) is exercised even at this toy size.
    out = encoder_forward(features, w, b, gamma, beta,
                          pooling_kernel=4, batch_tile=8)
    out = jax.block_until_ready(out)

    # Reference uses the same bf16-rounded features the kernel reads.
    features_bf16 = features.astype(jnp.bfloat16).astype(jnp.float32)
    ref = reference_forward(features_bf16, w, b, gamma, beta)

    assert out.shape == (B, E)
    assert jnp.allclose(out, ref, atol=1e-2, rtol=1e-2), (
        float(jnp.max(jnp.abs(out - ref))))

    print("KERNEL_OK")
</pallas_src>

<mosaic_0001>
module attributes {stable_mosaic.version = 11 : i64} {
  func.func @_pool_linear_kernel(%arg0: i32, %arg1: memref<8x16x256xbf16, #tpu.memory_space<vmem>>, %arg2: memref<256x128xf32, #tpu.memory_space<vmem>>, %arg3: memref<8x128xf32, #tpu.memory_space<vmem>>) attributes {dimension_semantics = [#tpu.dimension_semantics<parallel>], iteration_bounds = array<i64: 2>, scalar_prefetch = 0 : i64, scratch_operands = 0 : i64, tpu.core_type = #tpu.core_type<tc>, window_params = [{transform_indices = @transform_0, window_bounds = array<i64: 8, 16, 256>}, {pipeline_mode = #tpu.pipeline_mode<synchronous>, transform_indices = @transform_1, window_bounds = array<i64: 256, 128>}, {transform_indices = @transform_2, window_bounds = array<i64: 8, 128>}]} {
    %c0 = arith.constant 0 : index
    %c0_0 = arith.constant 0 : index
    %c0_1 = arith.constant 0 : index
    %0 = vector.load %arg1[%c0, %c0_0, %c0_1] : memref<8x16x256xbf16, #tpu.memory_space<vmem>>, vector<8x16x256xbf16>
    %1 = arith.extf %0 : vector<8x16x256xbf16> to vector<8x16x256xf32>
    %cst = arith.constant dense<0.000000e+00> : vector<8x256xf32>
    %2 = vector.multi_reduction <add>, %1, %cst [1] : vector<8x16x256xf32> to vector<8x256xf32>
    %cst_2 = arith.constant 6.250000e-02 : f32
    %3 = vector.broadcast %cst_2 : f32 to vector<8x256xf32>
    %4 = arith.mulf %2, %3 : vector<8x256xf32>
    %c0_3 = arith.constant 0 : index
    %c0_4 = arith.constant 0 : index
    %5 = vector.load %arg2[%c0_3, %c0_4] : memref<256x128xf32, #tpu.memory_space<vmem>>, vector<256x128xf32>
    %cst_5 = arith.constant dense<0.000000e+00> : vector<8x128xf32>
    %6 = tpu.matmul %4, %5, %cst_5 {dimension_numbers = #tpu.dot_dimension_numbers<[1], [0], [0], [1], [0, 0, 1, 1], [], []>} : vector<8x256xf32>, vector<256x128xf32>, vector<8x128xf32> -> vector<8x128xf32>
    %c0_6 = arith.constant 0 : index
    %c0_7 = arith.constant 0 : index
    %7 = vector.load %arg3[%c0_6, %c0_7] : memref<8x128xf32, #tpu.memory_space<vmem>>, vector<8x128xf32>
    tpu.vector_store %arg3[%c0_6, %c0_7], %6 {strides = array<i32>} : memref<8x128xf32, #tpu.memory_space<vmem>>, vector<8x128xf32>,
    return
  }
  func.func @transform_0(%arg0: i32) -> (i32, i32, i32) {
    %c0_i32 = arith.constant 0 : i32
    %c0_i32_0 = arith.constant 0 : i32
    %c0_i32_1 = arith.constant 0 : i32
    return %arg0, %c0_i32, %c0_i32_0 : i32, i32, i32
  }
  func.func @transform_1(%arg0: i32) -> (i32, i32) {
    %c0_i32 = arith.constant 0 : i32
    %c0_i32_0 = arith.constant 0 : i32
    %c0_i32_1 = arith.constant 0 : i32
    return %c0_i32, %c0_i32_0 : i32, i32
  }
  func.func @transform_2(%arg0: i32) -> (i32, i32) {
    %c0_i32 = arith.constant 0 : i32
    %c0_i32_0 = arith.constant 0 : i32
    return %arg0, %c0_i32 : i32, i32
  }
}

</mosaic_0001>

<bundles_post_ra>
// kernel: tpu_custom_call.1
= control target key start
LH: loop header
LB: loop body
LE: loop exit
PB: predicated region body
PF: predicated region fallthrough
CT: control target
= control target key end

     0   :  { %7 = vsyncpa [#allocation3], 0  ;;  %s1268_s0 = inlined_call_operand.hbm [shape: bf16[16,16,256], index: 0, kind: input, shape index: {}]   ;;  %s1269_s1 = inlined_call_operand.hbm [shape: f32[256,128], index: 1, kind: input, shape index: {}]   ;;  %s1270_s2 = inlined_call_operand.hbm [shape: f32[16,128], index: 2, kind: output, shape index: {}]  }
   0x1   :  { %9 = vsyncpa [#allocation3 + $0x1], 0 }
   0x2   :  { %10 = vsyncpa [#allocation6], 0 }
   0x3   :  { %11 = vsyncpa [#allocation4], 0 }
   0x4   :  { %13 = vsyncpa [#allocation4 + $0x1], 0  ;;  %s885_s9 = smov 0   ;;  %s887_s10 = smov 0  }
   0x5   :  { %s889_s11 = smov 0   ;;  %s891_s12 = smov 0  }
   0x6 LB: > { %s906_s13 = sadd.s32 4294967295, %s863_s12   ;;  %s591_s14 = sadd.s32 4294967294, %s863_s12   ;;  %s863_s12 = sphi %s891_s12, %s1297_s12   ;;  %s859_s11 = sphi %s889_s11, %s1296_s11   ;;  %s855_s10 = sphi %s887_s10, %s1295_s10   ;;  %s851_s9 = sphi %s885_s9, %s1294_s9  }
   0x7   : > { %p39_p0 = scmp.ne.s32.totalorder %s855_s10, %s851_s9  ;;  %p1271_p1 = scmp.eq.s32.totalorder %s906_s13, 0 }
   0x8   : > { %p90_p3 = scmp.eq.s32.totalorder %s591_s14, 1  ;;  %p592_p5 = scmp.ge.s32.totalorder %s863_s12, 1 }
   0x9   : > { %p915_p4 = por %p1271_p1, %p39_p0  ;;  %p97_p7 = scmp.lt.s32.totalorder %s863_s12, 3 }
   0xa   : > { %p920_p6 = por %p90_p3, %p39_p0  ;;  %s865_s18 = smov [#allocation5]  }
   0xb   : > { %s1274_s15 = scalar_select %p915_p4, 1, 0 }
   0xc   : > { %s1275_s16 = scalar_select %p920_p6, 1, 0 }
   0xd   : > { %p925_p8 = pnand %p592_p5, %p97_p7  ;;  %s109_s19 = sshll.u32 %s865_s18, 4  ;;  %s929_s19 = int_to_ptr.vmem [resolvable:$true] %s109_s19 }
   0xe   : > { %s941_s21 = sadd.s32 1, %s863_s12   ;;  %s26_s22 = sadd.s32 1, %s859_s11 }
   0xf   : > { %s1276_s17 = scalar_select %p925_p8, 1, 0 }
  0x10   : > { %p684_p9 = pneg %p925_p8  ;;  %s23_s23 = ssub.s32 %s863_s12, %s941_s21 }
  0x11   : > { %s735_s26 = scalar_lea.hbm %s1269_s1, 4096 }
  0x12   : > { %p936_p11 = pnand %p684_p9, %p1271_p1  ;;  %p736_p12 = scmp.ne.s32.totalorder %s1269_s1, %s735_s26 }
  0x13   : > { %p742_p5 = scmp.lt.u32.totalorder %s735_s26, %s1269_s1 }
  0x14   : > { %p737_p13 = pneg %p936_p11 }
  0x16   : > { %p738_p0 = pnand %p737_p13, %p736_p12 }
  0x18   : > { %p739_p3 = pneg %p738_p0 }
  0x1a   : > { %p744_p7 = pnand %p742_p5, %p739_p3 }
  0x1c   : > { %747 = shalt.err (!%p744_p7)
}
  0x1d   : > { %s748_s3 = scalar_lea.vmem %s929_s19, 4096  ;;  %p756_p2 = scmp.lt.s32.totalorder %s929_s19, %s929_s19 }
  0x1e   : > { %p749_p9 = scmp.ne.s32.totalorder %s929_s19, %s748_s3  ;;  %p757_p6 = scmp.lt.s32.totalorder %s748_s3, %s748_s3 }
  0x20   : > { %p751_p10 = pnand %p749_p9, %p737_p13  ;;  %p758_p4 = por %p757_p6, %p756_p2 }
  0x22   : > { %p752_p1 = pneg %p751_p10 }
  0x24   : > { %p759_p8 = pnand %p758_p4, %p752_p1 }
  0x26   : > { %762 = shalt.err (!%p759_p8)
}
  0x27   : > { %s866_s4 = smov 128   ;;  %s867_s5 = smov 8  }
  0x28   : > { %687 = dma.hbm_to_vmem [thread:$0]  (!%p936_p11), %s1269_s1, 4096, %s929_s19, [#allocation6], %s866_s4, %s866_s4, %s867_s5  }
  0x29   : > { %p24_p1 = scmp.eq.s32.totalorder %s23_s23, 0  ;;  %p33_p2 = scmp.ne.s32.totalorder %s859_s11, %s855_s10 }
  0x2a   : > { %p34_p4 = scmp.eq.s32.totalorder %s863_s12, 0  ;;  %p697_p6 = scmp.lt.s32.totalorder %s863_s12, 2 }
  0x2b   : > { %s975_s8 = scalar_select %p24_p1, %s859_s11, %s26_s22  }
  0x2c   : > { %p35_p8 = por %p34_p4, %p33_p2  ;;  %p1278_p10 = scmp.eq.s32.totalorder %s906_s13, 1 }
  0x2d   : > { %s123_s18 = sand.u32 1, %s859_s11   ;;  %s608_s20 = sshll.u32 %s863_s12, 11 }
  0x2e   : > { %p979_p12 = por %p1278_p10, %p33_p2  ;;  %s595_s24 = sshll.u32 %s123_s18, 7 }
  0x2f   : > { %s988_s27 = scalar_lea.hbm %s1268_s0, %s608_s20  ;;  %s127_s19 = scalar_lea.vmem [#allocation2], %s595_s24 }
  0x30   : > { %s135_s22 = sshll.u32 %s127_s19, 4  ;;  %p990_p11 = pnand %p697_p6, %p35_p8  ;;  %s994_s22 = int_to_ptr.vmem [resolvable:$true] %s135_s22 }
  0x31   : > { %s996_s28 = scalar_lea.sflag [#allocation3], %s123_s18  ;;  %s763_s29 = scalar_lea.hbm %s988_s27, 2048 }
  0x32   : > { %p764_p13 = scmp.ne.s32.totalorder %s988_s27, %s763_s29  ;;  %p765_p0 = pneg %p990_p11 }
  0x33   : > { %s768_s6 = scalar_lea.hbm %s1268_s0, 4096  ;;  %p769_p7 = scmp.lt.u32.totalorder %s988_s27, %s1268_s0 }
  0x34   : > { %p766_p3 = pnand %p765_p0, %p764_p13  ;;  %p770_p9 = scmp.lt.u32.totalorder %s768_s6, %s763_s29 }
  0x35   : > { %p772_p2 = scmp.lt.u32.totalorder %s763_s29, %s988_s27 }
  0x36   : > { %p767_p5 = pneg %p766_p3  ;;  %p771_p1 = por %p770_p9, %p769_p7 }
  0x38   : > { %p773_p4 = por %p772_p2, %p771_p1 }
  0x3a   : > { %p774_p6 = pnand %p773_p4, %p767_p5 }
  0x3c   : > { %777 = shalt.err (!%p774_p6)
}
  0x3d   : > { %s778_s18 = scalar_lea.vmem %s994_s22, 2048  ;;  %s868_s24 = smov [#allocation2]  }
  0x3e   : > { %p779_p8 = scmp.ne.s32.totalorder %s994_s22, %s778_s18  ;;  %s783_s25 = sshll.u32 %s868_s24, 4  ;;  %s784_s25 = int_to_ptr.vmem [resolvable:$false] %s783_s25 }
  0x3f   : > { %s785_s26 = scalar_lea.vmem %s784_s25, 4096  ;;  %p786_p3 = scmp.lt.s32.totalorder %s994_s22, %s784_s25 }
  0x40   : > { %p781_p10 = pnand %p779_p8, %p765_p0  ;;  %p787_p7 = scmp.lt.s32.totalorder %s785_s26, %s778_s18 }
  0x42   : > { %p782_p13 = pneg %p781_p10  ;;  %p788_p9 = por %p787_p7, %p786_p3 }
  0x44   : > { %p789_p1 = pnand %p788_p9, %p782_p13 }
  0x46   : > { %792 = shalt.err (!%p789_p1)
}
  0x47   : > { %691 = dma.hbm_to_vmem [thread:$0]  (!%p990_p11), %s988_s27, 2048, %s994_s22, %s996_s28, %s866_s4, %s866_s4, %s867_s5  }
  0x48   : > { %p1281_p0 = scmp.ne.s32.totalorder %s1276_s17, 0 }
  0x49   : > { %s1030_s19 = sand.u32 (!%p1281_p0), 1, %s855_s10   ;;  %p1282_p5 = scmp.ne.s32.totalorder (!%p1281_p0), %s1274_s15, 0 }
  0x4a   : > { %147 = sbr.rel (%p1281_p0) target bundleno = 377 (0x179), region = 28  ;;  %s600_s29 = sshll.u32 (!%p1281_p0), %s1030_s19, 7 }
  0x4b   : > { %s150_s30 = scalar_lea.sflag (!%p1281_p0), [#allocation3], %s1030_s19  ;;  %s1034_s3 = scalar_lea.vmem (!%p1281_p0), [#allocation2], %s600_s29 }
  0x51   : > { %838 = dma.done.wait (%p1282_p5), %s150_s30, 2048  }
  0x52   : > { %840 = vsyncadd (%p1282_p5), %s150_s30, 4294965248  ;;  %p1283_p11 = scmp.eq.s32.totalorder %s906_s13, 0 }
  0x54   : > { %842 = dma.done.wait (%p1283_p11), [#allocation6], 4096   ;;  %p1284_p2 = pmov %p1283_p11 }
  0x55   : > { %v371_v0 = vld [vmem:[#allocation5 + $0x80] sm:$0xff]  ;;  %v372_v1 = vld [vmem:[#allocation5 + $0x88] sm:$0xff]  ;;  %v373_v5 = vld [vmem:[#allocation5 + $0x90] sm:$0xff]  ;;  %vm403_vm0 = vcmask 1041409   ;;  %vm405_vm1 = vcmask 1042434   ;;  %vm407_vm2 = vcmask 1043459  }
  0x56   : > { %844 = vsyncadd (%p1284_p2), [#allocation6], 4294963200  ;;  %v355_v2 = vld [vmem:[#allocation5] sm:$0xff]  ;;  %v644_v3 = vpack.c.bf16 %v372_v1, %v371_v0  ;;  %v356_v4 = vld [vmem:[#allocation5 + $0x8] sm:$0xff]  ;;  %vm409_vm3 = vcmask 1044484   ;;  %vm411_vm4 = vcmask 1045509  }
  0x57   : > { %v374_v6 = vld [vmem:[#allocation5 + $0x98] sm:$0xff]  ;;  %v646_v7 = vpack.c.bf16 %v356_v4, %v355_v2  ;;  %v357_v9 = vld [vmem:[#allocation5 + $0x10] sm:$0xff]  ;;  %v375_v11 = vld [vmem:[#allocation5 + $0xa0] sm:$0xff]  ;;  %vm413_vm5 = vcmask 1046534   ;;  %vm415_vm6 = vcmask 1047559   ;;  %s602_s15 = sshll.u32 %s1030_s19, 3 }
  0x58   : > { %v648_v8 = vpack.c.bf16 %v374_v6, %v373_v5  ;;  %v358_v10 = vld [vmem:[#allocation5 + $0x18] sm:$0xff]  ;;  %645 = vmatprep.subr.bf16.mxu0 %v644_v3  ;;  %v376_v12 = vld [vmem:[#allocation5 + $0xa8] sm:$0xff]  ;;  %v359_v13 = vld [vmem:[#allocation5 + $0x20] sm:$0xff]  ;;  %s604_s17 = sshll.u32 %s906_s13, 7  ;;  %s177_s4 = scalar_lea.vmem [#allocation7], %s602_s15 }
  0x59   : > { %v360_v14 = vld [vmem:[#allocation5 + $0x28] sm:$0xff]  ;;  %647 = vmatpush3.bf16.msra.mxu0 %v646_v7  ;;  %v650_v15 = vpack.c.bf16 %v358_v10, %v357_v9  ;;  %v377_v16 = vld [vmem:[#allocation5 + $0xb0] sm:$0xff]  ;;  %v378_v17 = vld [vmem:[#allocation5 + $0xb8] sm:$0xff]  ;;  %v652_v19 = vpack.c.bf16 %v376_v12, %v375_v11  ;;  %s511_s5 = sshll.u32 %s177_s4, 4  ;;  %s1224_s23 = scalar_lea.hbm %s1270_s2, %s604_s17  ;;  %s1226_s5 = int_to_ptr.vmem [resolvable:$true] %s511_s5 }
  0x5a   : > { %v1044_v18 = vld [vmem:[#allocation5 + $0x30] sm:$0xff]  ;;  %649 = vmatprep.subr.bf16.mxu0 %v648_v8  ;;  %v1046_v20 = vld [vmem:[#allocation5 + $0x38] sm:$0xff]  ;;  %v1048_v21 = vld [vmem:[#allocation5 + $0xc0] sm:$0xff]  ;;  %v654_v29 = vpack.c.bf16 %v360_v14, %v359_v13  ;;  %v656_v33 = vpack.c.bf16 %v378_v17, %v377_v16  ;;  %s498_s28 = scalar_lea.sflag [#allocation4], %s1030_s19  ;;  %s793_s6 = scalar_lea.vmem %s1226_s5, 128 }
  0x5b   : > { %v1050_v22 = vld [vmem:[#allocation5 + $0xc8] sm:$0xff]  ;;  %v1052_v23 = vld [vmem:[#allocation5 + $0x40] sm:$0xff]  ;;  %v1056_v25 = vld [vmem:[#allocation5 + $0xd0] sm:$0xff]  ;;  %v658_v34 = vpack.c.bf16 %v1046_v20, %v1044_v18  ;;  %p794_p4 = scmp.ne.s32.totalorder %s1226_s5, %s793_s6  ;;  %s869_s13 = smov [#allocation7]  }
  0x5c   : > { %v1054_v24 = vld [vmem:[#allocation5 + $0x48] sm:$0xff]  ;;  %v1058_v26 = vld [vmem:[#allocation5 + $0xd8] sm:$0xff]  ;;  %v1060_v27 = vld [vmem:[#allocation5 + $0x50] sm:$0xff]  ;;  %v660_v35 = vpack.c.bf16 %v1050_v22, %v1048_v21  ;;  %s797_s7 = sshll.u32 %s869_s13, 4  ;;  %s798_s7 = int_to_ptr.vmem [resolvable:$false] %s797_s7 }
  0x5d   : > { %v1062_v28 = vld [vmem:[#allocation5 + $0x58] sm:$0xff]  ;;  %651 = vmatpush3.bf16.msra.mxu0 %v650_v15  ;;  %v1064_v30 = vld [vmem:[#allocation5 + $0xe0] sm:$0xff]  ;;  %v1066_v31 = vld [vmem:[#allocation5 + $0xe8] sm:$0xff]  ;;  %v662_v36 = vpack.c.bf16 %v1054_v24, %v1052_v23  ;;  %v664_v40 = vpack.c.bf16 %v1058_v26, %v1056_v25  ;;  %p795_p6 = pnand %p794_p4, %p979_p12  ;;  %s799_s20 = scalar_lea.vmem %s798_s7, 256 }
  0x5e   : > { %v1068_v32 = vld [vmem:[#allocation5 + $0x60] sm:$0xff]  ;;  %653 = vmatprep.subr.bf16.mxu0 %v652_v19  ;;  %v1076_v37 = vld [vmem:[#allocation5 + $0x68] sm:$0xff]  ;;  %v1078_v38 = vld [vmem:[#allocation5 + $0xf0] sm:$0xff]  ;;  %v666_v41 = vpack.c.bf16 %v1062_v28, %v1060_v27  ;;  %p800_p10 = scmp.lt.s32.totalorder %s1226_s5, %s798_s7  ;;  %p801_p13 = scmp.lt.s32.totalorder %s799_s20, %s793_s6 }
  0x5f   : > { %v1080_v39 = vld [vmem:[#allocation5 + $0xf8] sm:$0xff]  ;;  %v1090_v44 = vld [vmem:[#allocation5 + $0x70] sm:$0xff]  ;;  %v1095_v46 = vld [vmem:[%s1034_s3] sm:$0xff]  ;;  %p796_p8 = pneg %p795_p6 }
  0x60   : > { %v1092_v45 = vld [vmem:[#allocation5 + $0x78] sm:$0xff]  ;;  %v1102_v49 = vld [vmem:[%s1034_s3 + $0x8] sm:$0xff]  ;;  %v1105_v50 = vld [vmem:[%s1034_s3 + $0x10] sm:$0xff]  ;;  %v196_v52 = vunpack.c.h.bf16 %v1095_v46  ;;  %p802_p3 = por %p801_p13, %p800_p10 }
  0x61   : > { %v1108_v51 = vld [vmem:[%s1034_s3 + $0x18] sm:$0xff]  ;;  %655 = vmatpush3.bf16.msra.mxu0 %v654_v29  ;;  %v1113_v54 = vld [vmem:[%s1034_s3 + $0x20] sm:$0xff]  ;;  %v1116_v55 = vld [vmem:[%s1034_s3 + $0x28] sm:$0xff]  ;;  %v198_v57 = vunpack.c.h.bf16 %v1102_v49  ;;  %v200_v58 = vunpack.c.h.bf16 %v1105_v50 }
  0x62   : > { %v1119_v56 = vld [vmem:[%s1034_s3 + $0x30] sm:$0xff]  ;;  %v202_v59 = vunpack.c.h.bf16 %v1108_v51  ;;  %657 = vmatprep.subr.bf16.mxu0 %v656_v33  ;;  %v1126_v61 = vld [vmem:[%s1034_s3 + $0x38] sm:$0xff]  ;;  %v1129_v62 = vld [vmem:[%s1034_s3 + $0x40] sm:$0xff]  ;;  %v204_v0 = vunpack.c.h.bf16 %v1113_v54  ;;  %v206_v1 = vunpack.c.h.bf16 %v1116_v55  ;;  %p803_p7 = pnand %p802_p3, %p796_p8 }
  0x63   : > { %v1132_v63 = vld [vmem:[%s1034_s3 + $0x48] sm:$0xff]  ;;  %v208_v2 = vunpack.c.h.bf16 %v1119_v56  ;;  %v1139_v4 = vld [vmem:[%s1034_s3 + $0x50] sm:$0xff]  ;;  %v1142_v5 = vld [vmem:[%s1034_s3 + $0x58] sm:$0xff]  ;;  %v210_v7 = vunpack.c.h.bf16 %v1126_v61  ;;  %v212_v8 = vunpack.c.h.bf16 %v1129_v62  ;;  %v234_v10 = vadd.f32 %v198_v57, %v196_v52 }
  0x64   : > { %v1145_v6 = vld [vmem:[%s1034_s3 + $0x60] sm:$0xff]  ;;  %v214_v9 = vunpack.c.h.bf16 %v1132_v63  ;;  %v1151_v11 = vld [vmem:[%s1034_s3 + $0x68] sm:$0xff]  ;;  %v1154_v12 = vld [vmem:[%s1034_s3 + $0x70] sm:$0xff]  ;;  %v216_v14 = vunpack.c.h.bf16 %v1139_v4  ;;  %v218_v15 = vunpack.c.h.bf16 %v1142_v5  ;;  %v248_v17 = vadd.f32 %v202_v59, %v200_v58 }
  0x65   : > { %v1157_v13 = vld [vmem:[%s1034_s3 + $0x78] sm:$0xff]  ;;  %v220_v16 = vunpack.c.h.bf16 %v1145_v6  ;;  %659 = vmatpush3.bf16.msra.mxu0 %v658_v34  ;;  %v222_v18 = vunpack.c.h.bf16 %v1151_v11  ;;  %v224_v19 = vunpack.c.h.bf16 %v1154_v12  ;;  %v235_v21 = vrot.slane %v234_v10, 4 }
  0x66   : > { %v226_v20 = vunpack.c.h.bf16 %v1157_v13  ;;  %661 = vmatprep.subr.bf16.mxu0 %v660_v35  ;;  %v249_v22 = vrot.slane %v248_v17, 4  ;;  %v262_v29 = vadd.f32 %v206_v1, %v204_v0  ;;  %v276_v33 = vadd.f32 %v210_v7, %v208_v2 }
  0x67   : > { %v290_v52 = vadd.f32 %v214_v9, %v212_v8  ;;  %v236_v57 = vadd.f32 %v235_v21, %v234_v10  ;;  %v304_v3 = vadd.f32 %v218_v15, %v216_v14  ;;  %v318_v60 = vadd.f32 %v222_v18, %v220_v16 }
  0x68   : > { %v332_v53 = vadd.f32 %v226_v20, %v224_v19  ;;  %v250_v48 = vadd.f32 %v249_v22, %v248_v17  ;;  %v263_v47 = vrot.slane %v262_v29, 4  ;;  %v277_v58 = vrot.slane %v276_v33, 4 }
  0x69   : > { %v291_v34 = vrot.slane %v290_v52, 4  ;;  %663 = vmatpush3.bf16.msra.mxu0 %v662_v36  ;;  %v237_v59 = vrot.slane %v236_v57, 2  ;;  %v305_v43 = vrot.slane %v304_v3, 4  ;;  %v319_v42 = vrot.slane %v318_v60, 4 }
  0x6a   : > { %v333_v35 = vrot.slane %v332_v53, 4  ;;  %665 = vmatprep.subr.bf16.mxu0 %v664_v40  ;;  %v251_v0 = vrot.slane %v250_v48, 2  ;;  %v264_v1 = vadd.f32 %v263_v47, %v262_v29  ;;  %v278_v2 = vadd.f32 %v277_v58, %v276_v33 }
  0x6b   : > { %v292_v7 = vadd.f32 %v291_v34, %v290_v52  ;;  %v238_v8 = vadd.f32 %v237_v59, %v236_v57  ;;  %v306_v9 = vadd.f32 %v305_v43, %v304_v3  ;;  %v320_v10 = vadd.f32 %v319_v42, %v318_v60 }
  0x6c   : > { %v334_v14 = vadd.f32 %v333_v35, %v332_v53  ;;  %v252_v23 = vadd.f32 %v251_v0, %v250_v48  ;;  %v265_v24 = vrot.slane %v264_v1, 2  ;;  %v279_v36 = vrot.slane %v278_v2, 2 }
  0x6d   : > { %v293_v15 = vrot.slane %v292_v7, 2  ;;  %667 = vmatpush3.bf16.msra.mxu0 %v666_v41  ;;  %v239_v25 = vrot.slane %v238_v8, 1  ;;  %v307_v26 = vrot.slane %v306_v9, 2  ;;  %v321_v40 = vrot.slane %v320_v10, 2 }
  0x6e   : > { %v335_v47 = vrot.slane %v334_v14, 2  ;;  %v1285_v43 = vpack.c.bf16 %v1066_v31, %v1064_v30  ;;  %v253_v42 = vrot.slane %v252_v23, 1  ;;  %v266_v53 = vadd.f32 %v265_v24, %v264_v1 }
  0x6f   : > { %v280_v48 = vadd.f32 %v279_v36, %v278_v2  ;;  %v294_v60 = vadd.f32 %v293_v15, %v292_v7  ;;  %v240_v3 = vadd.f32 %v239_v25, %v238_v8  ;;  %v308_v16 = vadd.f32 %v307_v26, %v306_v9 }
  0x70   : > { %669 = vmatprep.subr.bf16.mxu0 %v1285_v43  ;;  %v322_v17 = vadd.f32 %v321_v40, %v320_v10  ;;  %v336_v18 = vadd.f32 %v335_v47, %v334_v14  ;;  %v254_v27 = vadd.f32 %v253_v42, %v252_v23  ;;  %v267_v28 = vrot.slane %v266_v53, 1 }
  0x71   : > { %v281_v41 = vrot.slane %v280_v48, 1  ;;  %v295_v19 = vrot.slane %v294_v60, 1  ;;  %v1286_v20 = vpack.c.bf16 %v1076_v37, %v1068_v32  ;;  %v309_v30 = vrot.slane %v308_v16, 1 }
  0x72   : > { %v323_v31 = vrot.slane %v322_v17, 1  ;;  %v337_v21 = vrot.slane %v336_v18, 1  ;;  %v340_v22 = vmul.f32 0.0625, %v240_v3  ;;  %v1287_v29 = vpack.c.bf16 %v1080_v39, %v1078_v38 }
  0x73   : > { %671 = vmatpush3.bf16.msra.mxu0 %v1286_v20  ;;  %v268_v33 = vadd.f32 %v267_v28, %v266_v53  ;;  %v282_v52 = vadd.f32 %v281_v41, %v280_v48  ;;  %v296_v57 = vadd.f32 %v295_v19, %v294_v60  ;;  %v342_v58 = vmul.f32 0.0625, %v254_v27 }
  0x74   : > { %673 = vmatprep.subr.bf16.mxu0 %v1287_v29  ;;  %v310_v34 = vadd.f32 %v309_v30, %v308_v16  ;;  %v324_v59 = vadd.f32 %v323_v31, %v322_v17  ;;  %v338_v35 = vadd.f32 %v337_v21, %v336_v18  ;;  %v201_v0 = vunpack.c.l.bf16 %v1108_v51 }
  0x75   : > { %v344_v1 = vmul.f32 0.0625, %v268_v33  ;;  %v346_v32 = vmul.f32 0.0625, %v282_v52  ;;  %v348_v37 = vmul.f32 0.0625, %v296_v57  ;;  %v417_v2 = vsel %vm403_vm0, %v342_v58, %v340_v22 }
  0x76   : > { %v1288_v7 = vpack.c.bf16 %v1092_v45, %v1090_v44  ;;  %v350_v38 = vmul.f32 0.0625, %v310_v34  ;;  %v352_v39 = vmul.f32 0.0625, %v324_v59  ;;  %v354_v8 = vmul.f32 0.0625, %v338_v35 }
  0x77   : > { %v203_v9 = vunpack.c.l.bf16 %v1113_v54  ;;  %v418_v10 = vsel %vm405_vm1, %v344_v1, %v417_v2  ;;  %v205_v14 = vunpack.c.l.bf16 %v1116_v55  ;;  %v207_v51 = vunpack.c.l.bf16 %v1119_v56 }
  0x78   : > { %675 = vmatpush3.bf16.msra.mxu0 %v1288_v7  ;;  %v209_v23 = vunpack.c.l.bf16 %v1126_v61  ;;  %v419_v24 = vsel %vm407_vm2, %v346_v32, %v418_v10  ;;  %v211_v36 = vunpack.c.l.bf16 %v1129_v62  ;;  %v213_v44 = vunpack.c.l.bf16 %v1132_v63 }
  0x79   : > { %v215_v45 = vunpack.c.l.bf16 %v1139_v4  ;;  %v420_v15 = vsel %vm409_vm3, %v348_v37, %v419_v24  ;;  %v217_v54 = vunpack.c.l.bf16 %v1142_v5  ;;  %v219_v25 = vunpack.c.l.bf16 %v1145_v6 }
  0x7a   : > { %v221_v55 = vunpack.c.l.bf16 %v1151_v11  ;;  %v421_v56 = vsel %vm411_vm4, %v350_v38, %v420_v15  ;;  %v223_v61 = vunpack.c.l.bf16 %v1154_v12  ;;  %v225_v26 = vunpack.c.l.bf16 %v1157_v13 }
  0x7b   : > { %v1289_v62 = vunpack.c.l.bf16 %v1095_v46  ;;  %v1290_v63 = vunpack.c.l.bf16 %v1102_v49  ;;  %v422_v4 = vsel %vm413_vm5, %v352_v39, %v421_v56  ;;  %v1291_v47 = vunpack.c.l.bf16 %v1105_v50 }
  0x7c   : > { %v255_v43 = vadd.f32 %v205_v14, %v203_v9  ;;  %v269_v6 = vadd.f32 %v209_v23, %v207_v51  ;;  %v423_v11 = vsel %vm415_vm6, %v354_v8, %v422_v4  ;;  %v283_v53 = vadd.f32 %v213_v44, %v211_v36 }
  0x7d   : > { %v227_v40 = vadd.f32 %v1290_v63, %v1289_v62  ;;  %v241_v5 = vadd.f32 %v201_v0, %v1291_v47  ;;  %v297_v48 = vadd.f32 %v217_v54, %v215_v45  ;;  %490 = vmatprep.mubr.f32.mxu0 %v423_v11  ;;  %v311_v46 = vadd.f32 %v221_v55, %v219_v25 }
  0x7e   : > { %v256_v13 = vrot.slane %v255_v43, 4  ;;  %v270_v60 = vrot.slane %v269_v6, 4  ;;  %v284_v49 = vrot.slane %v283_v53, 4  ;;  %v325_v17 = vadd.f32 %v225_v26, %v223_v61 }
  0x7f   : > { %v228_v42 = vrot.slane %v227_v40, 4  ;;  %v242_v12 = vrot.slane %v241_v5, 4  ;;  %v298_v16 = vrot.slane %v297_v48, 4  ;;  %v312_v28 = vrot.slane %v311_v46, 4 }
  0x80   : > { %v257_v27 = vadd.f32 %v256_v13, %v255_v43  ;;  %v271_v50 = vadd.f32 %v270_v60, %v269_v6  ;;  %v285_v19 = vadd.f32 %v284_v49, %v283_v53  ;;  %v326_v30 = vrot.slane %v325_v17, 4 }
  0x81   : > { %v229_v3 = vadd.f32 %v228_v42, %v227_v40  ;;  %v243_v18 = vadd.f32 %v242_v12, %v241_v5  ;;  %v299_v20 = vadd.f32 %v298_v16, %v297_v48  ;;  %v313_v29 = vadd.f32 %v312_v28, %v311_v46 }
  0x82   : > { %v258_v21 = vrot.slane %v257_v27, 2  ;;  %v272_v22 = vrot.slane %v271_v50, 2  ;;  %v286_v52 = vrot.slane %v285_v19, 2  ;;  %v327_v58 = vadd.f32 %v326_v30, %v325_v17 }
  0x83   : > { %v230_v41 = vrot.slane %v229_v3, 2  ;;  %v244_v31 = vrot.slane %v243_v18, 2  ;;  %v300_v57 = vrot.slane %v299_v20, 2  ;;  %v314_v0 = vrot.slane %v313_v29, 2 }
  0x84   : > { %v259_v59 = vadd.f32 %v258_v21, %v257_v27  ;;  %v273_v35 = vadd.f32 %v272_v22, %v271_v50  ;;  %v287_v32 = vadd.f32 %v286_v52, %v285_v19  ;;  %v328_v2 = vrot.slane %v327_v58, 2 }
  0x85   : > { %v231_v33 = vadd.f32 %v230_v41, %v229_v3  ;;  %v245_v34 = vadd.f32 %v244_v31, %v243_v18  ;;  %v301_v37 = vadd.f32 %v300_v57, %v299_v20  ;;  %v315_v8 = vadd.f32 %v314_v0, %v313_v29 }
  0x86   : > { %v260_v38 = vrot.slane %v259_v59, 1  ;;  %v274_v39 = vrot.slane %v273_v35, 1  ;;  %v288_v10 = vrot.slane %v287_v32, 1  ;;  %v329_v51 = vadd.f32 %v328_v2, %v327_v58 }
  0x87   : > { %v232_v1 = vrot.slane %v231_v33, 1  ;;  %v246_v7 = vrot.slane %v245_v34, 1  ;;  %v302_v14 = vrot.slane %v301_v37, 1  ;;  %v316_v44 = vrot.slane %v315_v8, 1 }
  0x88   : > { %v261_v24 = vadd.f32 %v260_v38, %v259_v59  ;;  %v275_v36 = vadd.f32 %v274_v39, %v273_v35  ;;  %v289_v45 = vadd.f32 %v288_v10, %v287_v32  ;;  %v330_v54 = vrot.slane %v329_v51, 1 }
  0x89   : > { %v233_v9 = vadd.f32 %v232_v1, %v231_v33  ;;  %v247_v23 = vadd.f32 %v246_v7, %v245_v34  ;;  %v303_v15 = vadd.f32 %v302_v14, %v301_v37  ;;  %v317_v55 = vadd.f32 %v316_v44, %v315_v8 }
  0x8a   : > { %v343_v61 = vmul.f32 0.0625, %v261_v24  ;;  %v345_v26 = vmul.f32 0.0625, %v275_v36  ;;  %v331_v62 = vadd.f32 %v330_v54, %v329_v51  ;;  %v347_v63 = vmul.f32 0.0625, %v289_v45 }
  0x8b   : > { %v339_v25 = vmul.f32 0.0625, %v233_v9  ;;  %v341_v56 = vmul.f32 0.0625, %v247_v23  ;;  %v349_v40 = vmul.f32 0.0625, %v303_v15  ;;  %v351_v47 = vmul.f32 0.0625, %v317_v55 }
  0x8c   : > { %v353_v43 = vmul.f32 0.0625, %v331_v62 }
  0x8d   : > { %v404_v4 = vsel %vm403_vm0, %v341_v56, %v339_v25 }
  0x8e   : > { %v406_v5 = vsel %vm405_vm1, %v343_v61, %v404_v4 }
  0x8f   : > { %v408_v6 = vsel %vm407_vm2, %v345_v26, %v406_v5 }
  0x90   : > { %v410_v11 = vsel %vm409_vm3, %v347_v63, %v408_v6 }
  0x91   : > { %v412_v42 = vsel %vm411_vm4, %v349_v40, %v410_v11 }
  0x92   : > { %v414_v53 = vsel %vm413_vm5, %v351_v47, %v412_v42 }
  0x93   : > { %v416_v48 = vsel %vm415_vm6, %v353_v43, %v414_v53 }
  0x94   : > { %491 = vmatmul.mubr.f32.vlgmr.msra.gmra.mrb[0].mxu0 %v416_v48 }
 0x167   : > { %v641_v12 = vpop.f32.mrb[0].mxu0 }
 0x168   : > { %v642_v13 = vpop.f32.mrb[1].mxu0 }
 0x169   : > { %v643_v60 = vadd.f32 %v642_v13, %v641_v12 }
 0x16b   : > { %496 = vst [vmem:[%s177_s4] sm:$0xff] %v643_v60 }
 0x16c   : > { %806 = shalt.err (!%p803_p7)
}
 0x16d   : > { %s807_s18 = scalar_lea.hbm %s1224_s23, 128  ;;  %s811_s26 = scalar_lea.hbm %s1270_s2, 256 }
 0x16e   : > { %p808_p9 = scmp.ne.s32.totalorder %s1224_s23, %s807_s18  ;;  %p812_p5 = scmp.lt.u32.totalorder %s1224_s23, %s1270_s2 }
 0x16f   : > { %p813_p11 = scmp.lt.u32.totalorder %s811_s26, %s807_s18  ;;  %p815_p4 = scmp.lt.u32.totalorder %s807_s18, %s1224_s23 }
 0x170   : > { %p809_p1 = pnand %p808_p9, %p979_p12 }
 0x171   : > { %p814_p2 = por %p813_p11, %p812_p5 }
 0x172   : > { %p810_p0 = pneg %p809_p1 }
 0x173   : > { %p816_p6 = por %p815_p4, %p814_p2 }
 0x175   : > { %p817_p8 = pnand %p816_p6, %p810_p0 }
 0x177   : > { %820 = shalt.err (!%p817_p8)
}
 0x178   : > { %682 = dma.vmem_to_hbm [thread:$0]  (%p979_p12), %s1226_s5, 128, %s1224_s23, %s498_s28  }
 0x179 PF: > { %s523_s30 = sand.u32 1, %s851_s9   ;;  %p1292_p10 = scmp.ne.s32.totalorder %s1275_s16, 0 }
 0x17a   : > { %p1293_p13 = scmp.ge.s32.totalorder %s863_s12, 2  ;;  %s524_s3 = scalar_lea.sflag [#allocation4], %s523_s30 }
 0x17c   : > { %p693_p3 = pnand %p1293_p13, %p1292_p10 }
 0x17e   : > { %846 = dma.done.wait (!%p693_p3), %s524_s3, 128  }
 0x17f   : > { %848 = vsyncadd (!%p693_p3), %s524_s3, 4294967168  ;;  %p16_p7 = scmp.ge.s32.totalorder %s941_s21, 4   ;;  %s1294_s9 = smov %s855_s10 }
 0x180   : > { %s1295_s10 = smov %s859_s11  ;;  %s1296_s11 = smov %s975_s8 }
 0x181   : > { %s1297_s12 = smov %s941_s21  ;;  %18 = sbr.rel (!%p16_p7) target bundleno = 6 (0x6), region = 77 }
 0x188   :  { %529 = vsyncpa [#allocation3], 1 }
 0x189   :  { %531 = vsyncpa [#allocation3 + $0x1], 1 }
 0x18a   :  { %532 = vsyncpa [#allocation6], 1 }
 0x18b   :  { %533 = vsyncpa [#allocation4], 1 }
 0x18c   :  { %535 = vsyncpa [#allocation4 + $0x1], 1 }

</bundles_post_ra>
